<compile_context>
chip_gen: v7x
topology: tpu7x:2x2x1
jax: 0.10.0
libtpu: 0.0.40
codegen_flags: <defaults>
</compile_context>

<pallas_src>
import jax
import jax.numpy as jnp
from jax.experimental import pallas as pl
from jax.experimental.pallas import tpu as pltpu


# ----------------------------- VMEM streaming copy -----------------------------

def _copy_kernel(x_ref, o_ref):
    # Same-shape lane-dense tile copy: pure vld/vst, no relayout, no XLU.
    o_ref[...] = x_ref[...]


_LANE_CHOICES = (1024, 512, 256, 128)     # widest lane-dense slab first
_MAX_DMA_CHUNKS = 64                      # cap on statically unrolled DMA chunks
_DMA_BUFS = 4                             # DMA copies in flight (ring)


def _choose_slab(total_elems):
    """Pick a (rows, lanes) 2-D slab with lanes a multiple of 128, or None."""
    for lanes in _LANE_CHOICES:
        if total_elems % lanes == 0:
            return total_elems // lanes, lanes
    return None


def _sublane_multiple(dtype):
    # None => dtype not supported on the Pallas path (e.g. 8-byte dtypes).
    itemsize = jnp.dtype(dtype).itemsize
    return {4: 8, 2: 16, 1: 32}.get(itemsize)


def _gen_config():
    """Generation-aware tile / VMEM-limit / DMA-chunk sizing."""
    kind = ""
    try:
        kind = jax.devices()[0].device_kind.lower()
    except Exception:
        pass
    if "v7" in kind:
        # 64 MiB physical / 32 MiB scoped per TC: 4 MiB x (3 in + 3 out) = 24 MiB.
        return dict(gen="v7x", tile_bytes=4 << 20, vmem_limit=32 << 20,
                    dma_chunk=8 << 20)
    if "v6" in kind or "v5p" in kind:
        # 128 MiB physical: 4 MiB x 4 resident buffers = 16 MiB, limit lifted to 64.
        return dict(gen="v6e", tile_bytes=4 << 20, vmem_limit=64 << 20,
                    dma_chunk=8 << 20)
    if "v5" in kind:
        # v5e: keep 2 MiB tiles; lift scoped limit above the 16 MiB default anyway.
        return dict(gen="v5e", tile_bytes=2 << 20, vmem_limit=32 << 20,
                    dma_chunk=8 << 20)
    return dict(gen=None, tile_bytes=2 << 20, vmem_limit=32 << 20,
                dma_chunk=8 << 20)


def _pick_tile_rows(rows, sub, bytes_per_row, target_bytes):
    """Tile rows: multiple of the sublane pack, prefer an exact divisor of rows."""
    if rows <= sub:
        return rows                         # full-extent block is always legal
    target_r = max(sub, min(rows, target_bytes // max(1, bytes_per_row)))
    target_r = max(sub, (target_r // sub) * sub)
    target_r = min(target_r, rows)
    if rows % sub == 0:
        # Search down for a divisor of rows -> every block full, no masked tail.
        for t in range(target_r, sub - 1, -sub):
            if rows % t == 0:
                return t
    return target_r                          # legal; last block may be partial


def _build_vmem_copy(rows, lanes, dtype, tile_r, *, semantics, vmem_limit,
                     buffer_count=None, donate=False):
    itemsize = jnp.dtype(dtype).itemsize
    spec_kwargs = {}
    if buffer_count is not None:
        spec_kwargs["pipeline_mode"] = pl.Buffered(buffer_count)
    in_spec = pl.BlockSpec((tile_r, lanes), lambda i: (i, 0), **spec_kwargs)
    out_spec = pl.BlockSpec((tile_r, lanes), lambda i: (i, 0), **spec_kwargs)

    call_kwargs = {}
    if donate:
        # Safe ONLY because the in/out BlockSpecs and index maps are identical
        # (tile i is read and written at the same offset every grid step).
        call_kwargs["input_output_aliases"] = {0: 0}

    return pl.pallas_call(
        _copy_kernel,
        out_shape=jax.ShapeDtypeStruct((rows, lanes), dtype),
        grid=(pl.cdiv(rows, tile_r),),
        in_specs=[in_spec],
        out_specs=out_spec,
        compiler_params=pltpu.CompilerParams(
            dimension_semantics=(semantics,),
            vmem_limit_bytes=vmem_limit,
        ),
        cost_estimate=pl.CostEstimate(
            flops=0, transcendentals=0,
            bytes_accessed=2 * rows * lanes * itemsize),
        **call_kwargs,
    )


def _pallas_copy_2d(x2d, *, donate=False):
    rows, lanes = x2d.shape
    cfg = _gen_config()
    sub = _sublane_multiple(x2d.dtype)
    bytes_per_row = lanes * jnp.dtype(x2d.dtype).itemsize
    tile_r = _pick_tile_rows(rows, sub, bytes_per_row, cfg["tile_bytes"])

    options = []
    core_parallel = getattr(pltpu, "CORE_PARALLEL", None)
    if cfg["gen"] == "v7x" and core_parallel is not None:
        # Shard row tiles across v7x's 2 TensorCores; deepen buffering to hide
        # the per-step overhead at 3.2 TB/s.
        options.append(dict(semantics=core_parallel, buffer_count=3))
    options.append(dict(semantics="parallel", buffer_count=None))

    last_err = None
    for opt in options:
        try:
            fn = _build_vmem_copy(rows, lanes, x2d.dtype, tile_r,
                                  semantics=opt["semantics"],
                                  vmem_limit=cfg["vmem_limit"],
                                  buffer_count=opt["buffer_count"],
                                  donate=donate)
            return fn(x2d)
        except Exception as e:   # v7x-specific feature fallback only
            last_err = e
    raise last_err


# ------------------------------ HBM->HBM DMA copy ------------------------------

def _dma_copy_2d(x2d, *, target_chunk_bytes=None, nbuf=_DMA_BUFS):
    """Direct HBM->HBM DMA copy: no VMEM round trip, no vector work."""
    rows, lanes = x2d.shape
    dtype = x2d.dtype
    itemsize = jnp.dtype(dtype).itemsize
    cfg = _gen_config()
    if target_chunk_bytes is None:
        target_chunk_bytes = cfg["dma_chunk"]

    bytes_per_row = lanes * itemsize
    chunk_rows = max(1, min(rows, target_chunk_bytes // max(1, bytes_per_row)))
    chunk_rows = max(chunk_rows, -(-rows // _MAX_DMA_CHUNKS))   # cap chunk count

    chunks = []
    s = 0
    while s < rows:
        n = min(chunk_rows, rows - s)
        chunks.append((s, n))
        s += n
    n_chunks = len(chunks)
    nbuf = max(1, min(nbuf, n_chunks))

    def kernel(x_hbm, o_hbm, sem):
        def copy(idx):
            start, n = chunks[idx]                 # static Python ints
            return pltpu.make_async_copy(
                x_hbm.at[pl.ds(start, n)],
                o_hbm.at[pl.ds(start, n)],
                sem.at[idx % nbuf])

        for i in range(n_chunks):
            if i >= nbuf:
                copy(i - nbuf).wait()              # free this slot before reuse
            copy(i).start()
        for i in range(max(0, n_chunks - nbuf), n_chunks):
            copy(i).wait()                         # drain

    return pl.pallas_call(
        kernel,
        out_shape=jax.ShapeDtypeStruct((rows, lanes), dtype),
        in_specs=[pl.BlockSpec(memory_space=pl.ANY)],
        out_specs=pl.BlockSpec(memory_space=pl.ANY),
        scratch_shapes=[pltpu.SemaphoreType.DMA((nbuf,))],
        cost_estimate=pl.CostEstimate(
            flops=0, transcendentals=0,
            bytes_accessed=2 * rows * lanes * itemsize),
    )(x2d)


# ----------------------------------- Module ------------------------------------

class Reshape:
    """Pallas equivalent of the PyTorch Reshape module: x.reshape(*shape)."""

    def __init__(self, *args, min_pallas_bytes=1 << 20, dma_threshold_bytes=8 << 20):
        self.shape = tuple(args)
        self.min_pallas_bytes = min_pallas_bytes
        self.dma_threshold_bytes = dma_threshold_bytes

    def _resolve_shape(self, x):
        shape = list(self.shape)
        if -1 in shape:
            idx = shape.index(-1)
            known = 1
            for i, s in enumerate(shape):
                if i != idx:
                    known *= int(s)
            shape[idx] = x.size // max(1, known)
        return tuple(int(s) for s in shape)

    def __call__(self, x, force_pallas=False, path=None, donate=False):
        out_shape = self._resolve_shape(x)
        nbytes = x.size * jnp.dtype(x.dtype).itemsize
        slab = _choose_slab(x.size) if x.size > 0 else None
        supported = (x.size > 0
                     and slab is not None
                     and _sublane_multiple(x.dtype) is not None)

        use_pallas = supported and (force_pallas or nbytes >= self.min_pallas_bytes)
        if not use_pallas:
            # Contiguous reshape is metadata-only in XLA: no HBM traffic. Also the
            # correctness fallback for zero-size inputs, 8-byte dtypes and totals
            # not divisible by 128.
            return jnp.reshape(x, out_shape)

        rows, lanes = slab
        x2d = jnp.reshape(x, (rows, lanes))            # metadata-only
        if path is None:
            path = "dma" if nbytes >= self.dma_threshold_bytes else "vmem"
        if path == "dma":
            y2d = _dma_copy_2d(x2d)
        else:
            y2d = _pallas_copy_2d(x2d, donate=donate)
        return jnp.reshape(y2d, out_shape)             # metadata-only


# ------------------------------------ Demo -------------------------------------

if __name__ == "__main__":
    key = jax.random.PRNGKey(0)
    k0, k1, k2 = jax.random.split(key, 3)

    # 1) VMEM streaming-copy path on a typical small NCHW activation.
    x = jax.random.normal(k0, (2, 4, 16, 16), dtype=jnp.float32)
    module = Reshape(2, 4 * 16 * 16)                   # -> (2, 1024)
    ref = jnp.reshape(x, (2, 4 * 16 * 16))
    out = jax.block_until_ready(module(x, force_pallas=True, path="vmem"))
    assert out.shape == ref.shape, (out.shape, ref.shape)
    assert out.dtype == ref.dtype, (out.dtype, ref.dtype)
    assert bool(jnp.array_equal(out, ref)), "vmem copy path mismatch"

    # 2) Default dispatch on a tiny tensor: metadata-only fast path.
    out_fast = jax.block_until_ready(module(x))
    assert bool(jnp.array_equal(out_fast, ref)), "fast path mismatch"

    # 3) HBM->HBM DMA path on a slightly larger slab (single chunk).
    x_big = jax.random.normal(k1, (8, 128, 128), dtype=jnp.float32)   # 512 KiB
    ref_big = jnp.reshape(x_big, (8, 128 * 128))
    out_big = jax.block_until_ready(
        Reshape(8, -1)(x_big, force_pallas=True, path="dma"))
    assert bool(jnp.array_equal(out_big, ref_big)), "dma copy path mismatch"

    # 3b) Exercise the multi-chunk DMA ring (several copies in flight).
    x2d = jnp.reshape(x_big, (128, 1024))
    y2d = jax.block_until_ready(
        _dma_copy_2d(x2d, target_chunk_bytes=64 * 1024, nbuf=2))      # 8 chunks, ring of 2
    assert bool(jnp.array_equal(y2d, x2d)), "multi-chunk dma ring mismatch"

    # 4) Odd-sized total (not a multiple of 128) cleanly falls back to jnp.reshape.
    x_odd = jax.random.normal(k2, (2, 3, 5, 7), dtype=jnp.float32)
    out_odd = jax.block_until_ready(Reshape(-1, 7)(x_odd, force_pallas=True))
    assert bool(jnp.array_equal(out_odd, jnp.reshape(x_odd, (-1, 7)))), "odd fallback mismatch"

    # 5) Zero-element input is handled by the metadata-only fallback.
    x_zero = jnp.zeros((0, 4), dtype=jnp.float32)
    out_zero = Reshape(0, 2, 2)(x_zero, force_pallas=True)
    assert out_zero.shape == (0, 2, 2), "zero-size fallback mismatch"

    print("KERNEL_OK")
</pallas_src>

<mosaic_0001>
module attributes {stable_mosaic.version = 11 : i64} {
  func.func @_copy_kernel(%arg0: i32, %arg1: memref<2x1024xf32, #tpu.memory_space<vmem>>, %arg2: memref<2x1024xf32, #tpu.memory_space<vmem>>) attributes {dimension_semantics = [#tpu.dimension_semantics<parallel>], iteration_bounds = array<i64: 1>, scalar_prefetch = 0 : i64, scratch_operands = 0 : i64, tpu.core_type = #tpu.core_type<tc>, window_params = [{transform_indices = @transform_0, window_bounds = array<i64: 2, 1024>}, {transform_indices = @transform_1, window_bounds = array<i64: 2, 1024>}]} {
    %c0 = arith.constant 0 : index
    %c0_0 = arith.constant 0 : index
    %0 = vector.load %arg1[%c0, %c0_0] : memref<2x1024xf32, #tpu.memory_space<vmem>>, vector<2x1024xf32>
    %c0_1 = arith.constant 0 : index
    %c0_2 = arith.constant 0 : index
    %1 = vector.load %arg2[%c0_1, %c0_2] : memref<2x1024xf32, #tpu.memory_space<vmem>>, vector<2x1024xf32>
    tpu.vector_store %arg2[%c0_1, %c0_2], %0 {strides = array<i32>} : memref<2x1024xf32, #tpu.memory_space<vmem>>, vector<2x1024xf32>,
    return
  }
  func.func @transform_0(%arg0: i32) -> (i32, i32) {
    %c0_i32 = arith.constant 0 : i32
    %c0_i32_0 = arith.constant 0 : i32
    return %arg0, %c0_i32 : i32, i32
  }
  func.func @transform_1(%arg0: i32) -> (i32, i32) {
    %c0_i32 = arith.constant 0 : i32
    %c0_i32_0 = arith.constant 0 : i32
    return %arg0, %c0_i32 : i32, i32
  }
}

</mosaic_0001>

<bundles_post_ra>
// kernel: tpu_custom_call.1
= control target key start
LH: loop header
LB: loop body
LE: loop exit
PB: predicated region body
PF: predicated region fallthrough
CT: control target
= control target key end

     0   :  { %6 = vsyncpa [#allocation3], 0  ;;  %s126_s0 = inlined_call_operand.hbm [shape: f32[2,1024], index: 0, kind: input, shape index: {}]   ;;  %s127_s1 = inlined_call_operand.hbm [shape: f32[2,1024], index: 1, kind: output, shape index: {}]  }
   0x1   :  { %7 = vsyncpa [#allocation4], 0  ;;  %s90_s6 = smov [#allocation2]   ;;  %s42_s10 = scalar_lea.hbm %s126_s0, 256 }
   0x2   :  { %s14_s7 = sshll.u32 %s90_s6, 4  ;;  %p43_p0 = scmp.ne.s32.totalorder %s126_s0, %s42_s10  ;;  %s15_s7 = int_to_ptr.vmem [resolvable:$true] %s14_s7 }
   0x3   :  { %p46_p1 = scmp.lt.u32.totalorder %s42_s10, %s126_s0 }
   0x5   :  { %p48_p2 = pnand %p46_p1, %p43_p0 }
   0x7   :  { %51 = shalt.err (!%p48_p2)
}
   0x8   :  { %s52_s15 = scalar_lea.vmem %s15_s7, 256  ;;  %p57_p4 = scmp.lt.s32.totalorder %s15_s7, %s15_s7 }
   0x9   :  { %p53_p3 = scmp.ne.s32.totalorder %s15_s7, %s52_s15  ;;  %p58_p5 = scmp.lt.s32.totalorder %s52_s15, %s52_s15 }
   0xb   :  { %p59_p6 = por %p58_p5, %p57_p4 }
   0xd   :  { %p60_p7 = pnand %p59_p6, %p53_p3 }
   0xf   :  { %63 = shalt.err (!%p60_p7)
}
  0x10   :  { %17 = dma.hbm_to_vmem [thread:$0]  %s126_s0, 256, %s15_s7, [#allocation3]  }
  0x11   :  { %86 = dma.done.wait [#allocation3], 256  }
  0x12   :  { %87 = vsyncadd [#allocation3], 4294967040  ;;  %s91_s18 = smov [#allocation5]   ;;  %v21_v0 = vld [vmem:[#allocation2] sm:$0xff]  ;;  %v22_v1 = vld [vmem:[#allocation2 + $0x8] sm:$0xff] }
  0x13   :  { %s31_s19 = sshll.u32 %s91_s18, 4  ;;  %23 = vst [vmem:[#allocation5] sm:$0xff] %v21_v0  ;;  %24 = vst [vmem:[#allocation5 + $0x8] sm:$0xff] %v22_v1  ;;  %s32_s19 = int_to_ptr.vmem [resolvable:$true] %s31_s19 }
  0x14   :  { %s64_s20 = scalar_lea.vmem %s32_s19, 256  ;;  %p69_p9 = scmp.lt.s32.totalorder %s32_s19, %s32_s19 }
  0x15   :  { %p65_p8 = scmp.ne.s32.totalorder %s32_s19, %s64_s20  ;;  %p70_p10 = scmp.lt.s32.totalorder %s64_s20, %s64_s20 }
  0x17   :  { %p71_p11 = por %p70_p10, %p69_p9 }
  0x19   :  { %p72_p12 = pnand %p71_p11, %p65_p8 }
  0x1b   :  { %75 = shalt.err (!%p72_p12)
}
  0x1c   :  { %s76_s0 = scalar_lea.hbm %s127_s1, 256 }
  0x1d   :  { %p77_p13 = scmp.ne.s32.totalorder %s127_s1, %s76_s0  ;;  %p80_p0 = scmp.lt.u32.totalorder %s76_s0, %s127_s1 }
  0x1f   :  { %p82_p1 = pnand %p80_p0, %p77_p13 }
  0x21   :  { %85 = shalt.err (!%p82_p1)
}
  0x22   :  { %34 = dma.vmem_to_hbm [thread:$0]  %s32_s19, 256, %s127_s1, [#allocation4]  }
  0x23   :  { %88 = dma.done.wait [#allocation4], 256  }
  0x24   :  { %89 = vsyncadd [#allocation4], 4294967040 }
  0x25   :  { %38 = vsyncpa [#allocation3], 1 }
  0x26   :  { %39 = vsyncpa [#allocation4], 1 }

</bundles_post_ra>
